<compile_context>
chip_gen: v5e
topology: v5e:2x2
jax: 0.10.0
libtpu: 0.0.40
codegen_flags: <defaults>
</compile_context>

<pallas_src>
import functools

import jax
import jax.numpy as jnp
from jax.experimental import pallas as pl
from jax.experimental.pallas import tpu as pltpu

STATE_DIM = 4      # e.g. CartPole-like state
ACTION_NUM = 2
HIDDEN = 16

LANE = 128         # batch (lane) axis must be a multiple of this


def _round_up(n, m):
    return ((n + m - 1) // m) * m


def _mac_layer(x, w, b, relu):
    """y = w @ x + b, computed as unrolled VPU broadcast-MACs over the tiny K.

    x: (n_in,  TB)   activations, batch on lanes
    w: (n_out, n_in) weights (PyTorch [out, in] layout)
    b: (n_out, 1)    bias column
    """
    n_out, n_in = w.shape
    tb = x.shape[-1]
    acc = jnp.broadcast_to(b, (n_out, tb))            # bias broadcast hoisted once
    for k in range(n_in):                             # K in {4, 16}: fully unrolled
        acc = acc + w[:, k:k + 1] * x[k:k + 1, :]     # (n_out,1)*(1,TB) outer FMA
    return jnp.maximum(acc, 0.0) if relu else acc


def qnet_kernel(x_ref, w1_ref, b1_ref, w2_ref, b2_ref, w3_ref, b3_ref, o_ref):
    x = x_ref[...]                                              # (STATE_DIM, TB)
    h = _mac_layer(x, w1_ref[...], b1_ref[...], relu=True)      # (HIDDEN, TB)
    h = _mac_layer(h, w2_ref[...], b2_ref[...], relu=True)      # (HIDDEN, TB)
    o = _mac_layer(h, w3_ref[...], b3_ref[...], relu=False)     # (ACTION_NUM, TB)
    o_ref[...] = o.astype(o_ref.dtype)


@functools.partial(jax.jit, static_argnames=("tile_b",))
def qnet_forward(x, params, tile_b=8192):
    """x: (B, STATE_DIM) batch-major (PyTorch convention) -> (B, ACTION_NUM)."""
    w1, b1, w2, b2, w3, b3 = params
    B = x.shape[0]
    Bp = _round_up(B, LANE)                           # lane-align only (<=127 pad cols)
    tb = min(_round_up(tile_b, LANE), Bp)             # lane-aligned batch tile
    # Feature-major: batch on the 128-lane axis; padded columns sliced off below.
    x_t = jnp.pad(x.astype(jnp.float32).T, ((0, 0), (0, Bp - B)))

    const = lambda a: pl.BlockSpec(a.shape, lambda i: (0, 0))   # VMEM-resident
    out_t = pl.pallas_call(
        qnet_kernel,
        out_shape=jax.ShapeDtypeStruct((ACTION_NUM, Bp), jnp.float32),
        grid=(pl.cdiv(Bp, tb),),                      # ragged last tile handled by Pallas
        in_specs=[
            pl.BlockSpec((STATE_DIM, tb), lambda i: (0, i)),    # x tile, pipelined
            const(w1), const(b1), const(w2), const(b2), const(w3), const(b3),
        ],
        out_specs=pl.BlockSpec((ACTION_NUM, tb), lambda i: (0, i)),
        compiler_params=pltpu.CompilerParams(
            dimension_semantics=("parallel",)),       # v7x: tiles split across TCs
    )(x_t, w1, b1, w2, b2, w3, b3)
    return out_t[:, :B].T


def init_params(key):
    """PyTorch-style Linear init U(-1/sqrt(fan_in), 1/sqrt(fan_in)).

    Weights are kept in the native torch [out, in] layout; biases are stored as
    [out, 1] columns so they broadcast across the lane (batch) axis in-kernel.
    """
    def linear(k, fan_in, fan_out):
        kw, kb = jax.random.split(k)
        bound = 1.0 / jnp.sqrt(fan_in)
        w = jax.random.uniform(kw, (fan_out, fan_in), jnp.float32, -bound, bound)
        b = jax.random.uniform(kb, (fan_out, 1), jnp.float32, -bound, bound)
        return w, b

    k1, k2, k3 = jax.random.split(key, 3)
    w1, b1 = linear(k1, STATE_DIM, HIDDEN)
    w2, b2 = linear(k2, HIDDEN, HIDDEN)
    w3, b3 = linear(k3, HIDDEN, ACTION_NUM)
    return (w1, b1, w2, b2, w3, b3)


def qnet_reference(x, params):
    w1, b1, w2, b2, w3, b3 = params
    h = jnp.maximum(x @ w1.T + b1[:, 0], 0.0)
    h = jnp.maximum(h @ w2.T + b2[:, 0], 0.0)
    return h @ w3.T + b3[:, 0]


if __name__ == "__main__":
    key = jax.random.PRNGKey(0)
    kx, kx2, kp = jax.random.split(key, 3)
    params = init_params(kp)

    # Small batch (single 128-wide tile, grid=(1,)) — the DQN action-selection path.
    batch = 8
    state = jax.random.normal(kx, (batch, STATE_DIM), jnp.float32)
    q_vals = qnet_forward(state, params)
    jax.block_until_ready(q_vals)
    assert q_vals.shape == (batch, ACTION_NUM)
    assert jnp.allclose(q_vals, qnet_reference(state, params), atol=1e-5, rtol=1e-5), \
        "mismatch vs reference (small batch)"

    # Larger ragged batch exercising the pipelined multi-tile grid.
    batch2 = 300
    state2 = jax.random.normal(kx2, (batch2, STATE_DIM), jnp.float32)
    q_ref2 = qnet_reference(state2, params)

    q2 = qnet_forward(state2, params, tile_b=128)   # Bp=384, grid=(3,), exact tiles
    jax.block_until_ready(q2)
    assert q2.shape == (batch2, ACTION_NUM)
    assert jnp.allclose(q2, q_ref2, atol=1e-5, rtol=1e-5), \
        "mismatch vs reference (multi-tile batch)"

    q3 = qnet_forward(state2, params, tile_b=256)   # Bp=384, grid=(2,), ragged last tile
    jax.block_until_ready(q3)
    assert jnp.allclose(q3, q_ref2, atol=1e-5, rtol=1e-5), \
        "mismatch vs reference (ragged last tile)"

    print("KERNEL_OK")
</pallas_src>

<mosaic_0001>
module attributes {stable_mosaic.version = 11 : i64} {
  func.func @qnet_kernel(%arg0: i32, %arg1: memref<4x128xf32, #tpu.memory_space<vmem>>, %arg2: memref<16x4xf32, #tpu.memory_space<vmem>>, %arg3: memref<16x1xf32, #tpu.memory_space<vmem>>, %arg4: memref<16x16xf32, #tpu.memory_space<vmem>>, %arg5: memref<16x1xf32, #tpu.memory_space<vmem>>, %arg6: memref<2x16xf32, #tpu.memory_space<vmem>>, %arg7: memref<2x1xf32, #tpu.memory_space<vmem>>, %arg8: memref<2x128xf32, #tpu.memory_space<vmem>>) attributes {dimension_semantics = [#tpu.dimension_semantics<parallel>], iteration_bounds = array<i64: 1>, scalar_prefetch = 0 : i64, scratch_operands = 0 : i64, tpu.core_type = #tpu.core_type<tc>, window_params = [{transform_indices = @transform_0, window_bounds = array<i64: 4, 128>}, {pipeline_mode = #tpu.pipeline_mode<synchronous>, transform_indices = @transform_1, window_bounds = array<i64: 16, 4>}, {pipeline_mode = #tpu.pipeline_mode<synchronous>, transform_indices = @transform_2, window_bounds = array<i64: 16, 1>}, {pipeline_mode = #tpu.pipeline_mode<synchronous>, transform_indices = @transform_3, window_bounds = array<i64: 16, 16>}, {pipeline_mode = #tpu.pipeline_mode<synchronous>, transform_indices = @transform_4, window_bounds = array<i64: 16, 1>}, {pipeline_mode = #tpu.pipeline_mode<synchronous>, transform_indices = @transform_5, window_bounds = array<i64: 2, 16>}, {pipeline_mode = #tpu.pipeline_mode<synchronous>, transform_indices = @transform_6, window_bounds = array<i64: 2, 1>}, {transform_indices = @transform_7, window_bounds = array<i64: 2, 128>}]} {
    %c0 = arith.constant 0 : index
    %c0_0 = arith.constant 0 : index
    %0 = vector.load %arg1[%c0, %c0_0] : memref<4x128xf32, #tpu.memory_space<vmem>>, vector<4x128xf32>
    %c0_1 = arith.constant 0 : index
    %c0_2 = arith.constant 0 : index
    %1 = vector.load %arg2[%c0_1, %c0_2] : memref<16x4xf32, #tpu.memory_space<vmem>>, vector<16x4xf32>
    %c0_3 = arith.constant 0 : index
    %c0_4 = arith.constant 0 : index
    %2 = vector.load %arg3[%c0_3, %c0_4] : memref<16x1xf32, #tpu.memory_space<vmem>>, vector<16x1xf32>
    %3 = vector.shape_cast %2 : vector<16x1xf32> to vector<16x1xf32>
    %4 = vector.broadcast %3 : vector<16x1xf32> to vector<16x128xf32>
    %5 = vector.extract_strided_slice %1 {offsets = [0, 0], sizes = [16, 1], strides = [1, 1]} : vector<16x4xf32> to vector<16x1xf32>
    %6 = vector.extract_strided_slice %0 {offsets = [0, 0], sizes = [1, 128], strides = [1, 1]} : vector<4x128xf32> to vector<1x128xf32>
    %7 = vector.broadcast %5 : vector<16x1xf32> to vector<16x128xf32>
    %8 = vector.broadcast %6 : vector<1x128xf32> to vector<16x128xf32>
    %9 = arith.mulf %7, %8 : vector<16x128xf32>
    %10 = arith.addf %4, %9 : vector<16x128xf32>
    %11 = vector.extract_strided_slice %1 {offsets = [0, 1], sizes = [16, 1], strides = [1, 1]} : vector<16x4xf32> to vector<16x1xf32>
    %12 = vector.extract_strided_slice %0 {offsets = [1, 0], sizes = [1, 128], strides = [1, 1]} : vector<4x128xf32> to vector<1x128xf32>
    %13 = vector.broadcast %11 : vector<16x1xf32> to vector<16x128xf32>
    %14 = vector.broadcast %12 : vector<1x128xf32> to vector<16x128xf32>
    %15 = arith.mulf %13, %14 : vector<16x128xf32>
    %16 = arith.addf %10, %15 : vector<16x128xf32>
    %17 = vector.extract_strided_slice %1 {offsets = [0, 2], sizes = [16, 1], strides = [1, 1]} : vector<16x4xf32> to vector<16x1xf32>
    %18 = vector.extract_strided_slice %0 {offsets = [2, 0], sizes = [1, 128], strides = [1, 1]} : vector<4x128xf32> to vector<1x128xf32>
    %19 = vector.broadcast %17 : vector<16x1xf32> to vector<16x128xf32>
    %20 = vector.broadcast %18 : vector<1x128xf32> to vector<16x128xf32>
    %21 = arith.mulf %19, %20 : vector<16x128xf32>
    %22 = arith.addf %16, %21 : vector<16x128xf32>
    %23 = vector.extract_strided_slice %1 {offsets = [0, 3], sizes = [16, 1], strides = [1, 1]} : vector<16x4xf32> to vector<16x1xf32>
    %24 = vector.extract_strided_slice %0 {offsets = [3, 0], sizes = [1, 128], strides = [1, 1]} : vector<4x128xf32> to vector<1x128xf32>
    %25 = vector.broadcast %23 : vector<16x1xf32> to vector<16x128xf32>
    %26 = vector.broadcast %24 : vector<1x128xf32> to vector<16x128xf32>
    %27 = arith.mulf %25, %26 : vector<16x128xf32>
    %28 = arith.addf %22, %27 : vector<16x128xf32>
    %cst = arith.constant 0.000000e+00 : f32
    %29 = vector.broadcast %cst : f32 to vector<16x128xf32>
    %30 = arith.maximumf %28, %29 : vector<16x128xf32>
    %c0_5 = arith.constant 0 : index
    %c0_6 = arith.constant 0 : index
    %31 = vector.load %arg4[%c0_5, %c0_6] : memref<16x16xf32, #tpu.memory_space<vmem>>, vector<16x16xf32>
    %c0_7 = arith.constant 0 : index
    %c0_8 = arith.constant 0 : index
    %32 = vector.load %arg5[%c0_7, %c0_8] : memref<16x1xf32, #tpu.memory_space<vmem>>, vector<16x1xf32>
    %33 = vector.shape_cast %32 : vector<16x1xf32> to vector<16x1xf32>
    %34 = vector.broadcast %33 : vector<16x1xf32> to vector<16x128xf32>
    %35 = vector.extract_strided_slice %31 {offsets = [0, 0], sizes = [16, 1], strides = [1, 1]} : vector<16x16xf32> to vector<16x1xf32>
    %36 = vector.extract_strided_slice %30 {offsets = [0, 0], sizes = [1, 128], strides = [1, 1]} : vector<16x128xf32> to vector<1x128xf32>
    %37 = vector.broadcast %35 : vector<16x1xf32> to vector<16x128xf32>
    %38 = vector.broadcast %36 : vector<1x128xf32> to vector<16x128xf32>
    %39 = arith.mulf %37, %38 : vector<16x128xf32>
    %40 = arith.addf %34, %39 : vector<16x128xf32>
    %41 = vector.extract_strided_slice %31 {offsets = [0, 1], sizes = [16, 1], strides = [1, 1]} : vector<16x16xf32> to vector<16x1xf32>
    %42 = vector.extract_strided_slice %30 {offsets = [1, 0], sizes = [1, 128], strides = [1, 1]} : vector<16x128xf32> to vector<1x128xf32>
    %43 = vector.broadcast %41 : vector<16x1xf32> to vector<16x128xf32>
    %44 = vector.broadcast %42 : vector<1x128xf32> to vector<16x128xf32>
    %45 = arith.mulf %43, %44 : vector<16x128xf32>
    %46 = arith.addf %40, %45 : vector<16x128xf32>
    %47 = vector.extract_strided_slice %31 {offsets = [0, 2], sizes = [16, 1], strides = [1, 1]} : vector<16x16xf32> to vector<16x1xf32>
    %48 = vector.extract_strided_slice %30 {offsets = [2, 0], sizes = [1, 128], strides = [1, 1]} : vector<16x128xf32> to vector<1x128xf32>
    %49 = vector.broadcast %47 : vector<16x1xf32> to vector<16x128xf32>
    %50 = vector.broadcast %48 : vector<1x128xf32> to vector<16x128xf32>
    %51 = arith.mulf %49, %50 : vector<16x128xf32>
    %52 = arith.addf %46, %51 : vector<16x128xf32>
    %53 = vector.extract_strided_slice %31 {offsets = [0, 3], sizes = [16, 1], strides = [1, 1]} : vector<16x16xf32> to vector<16x1xf32>
    %54 = vector.extract_strided_slice %30 {offsets = [3, 0], sizes = [1, 128], strides = [1, 1]} : vector<16x128xf32> to vector<1x128xf32>
    %55 = vector.broadcast %53 : vector<16x1xf32> to vector<16x128xf32>
    %56 = vector.broadcast %54 : vector<1x128xf32> to vector<16x128xf32>
    %57 = arith.mulf %55, %56 : vector<16x128xf32>
    %58 = arith.addf %52, %57 : vector<16x128xf32>
    %59 = vector.extract_strided_slice %31 {offsets = [0, 4], sizes = [16, 1], strides = [1, 1]} : vector<16x16xf32> to vector<16x1xf32>
    %60 = vector.extract_strided_slice %30 {offsets = [4, 0], sizes = [1, 128], strides = [1, 1]} : vector<16x128xf32> to vector<1x128xf32>
    %61 = vector.broadcast %59 : vector<16x1xf32> to vector<16x128xf32>
    %62 = vector.broadcast %60 : vector<1x128xf32> to vector<16x128xf32>
    %63 = arith.mulf %61, %62 : vector<16x128xf32>
    %64 = arith.addf %58, %63 : vector<16x128xf32>
    %65 = vector.extract_strided_slice %31 {offsets = [0, 5], sizes = [16, 1], strides = [1, 1]} : vector<16x16xf32> to vector<16x1xf32>
    %66 = vector.extract_strided_slice %30 {offsets = [5, 0], sizes = [1, 128], strides = [1, 1]} : vector<16x128xf32> to vector<1x128xf32>
    %67 = vector.broadcast %65 : vector<16x1xf32> to vector<16x128xf32>
    %68 = vector.broadcast %66 : vector<1x128xf32> to vector<16x128xf32>
    %69 = arith.mulf %67, %68 : vector<16x128xf32>
    %70 = arith.addf %64, %69 : vector<16x128xf32>
    %71 = vector.extract_strided_slice %31 {offsets = [0, 6], sizes = [16, 1], strides = [1, 1]} : vector<16x16xf32> to vector<16x1xf32>
    %72 = vector.extract_strided_slice %30 {offsets = [6, 0], sizes = [1, 128], strides = [1, 1]} : vector<16x128xf32> to vector<1x128xf32>
    %73 = vector.broadcast %71 : vector<16x1xf32> to vector<16x128xf32>
    %74 = vector.broadcast %72 : vector<1x128xf32> to vector<16x128xf32>
    %75 = arith.mulf %73, %74 : vector<16x128xf32>
    %76 = arith.addf %70, %75 : vector<16x128xf32>
    %77 = vector.extract_strided_slice %31 {offsets = [0, 7], sizes = [16, 1], strides = [1, 1]} : vector<16x16xf32> to vector<16x1xf32>
    %78 = vector.extract_strided_slice %30 {offsets = [7, 0], sizes = [1, 128], strides = [1, 1]} : vector<16x128xf32> to vector<1x128xf32>
    %79 = vector.broadcast %77 : vector<16x1xf32> to vector<16x128xf32>
    %80 = vector.broadcast %78 : vector<1x128xf32> to vector<16x128xf32>
    %81 = arith.mulf %79, %80 : vector<16x128xf32>
    %82 = arith.addf %76, %81 : vector<16x128xf32>
    %83 = vector.extract_strided_slice %31 {offsets = [0, 8], sizes = [16, 1], strides = [1, 1]} : vector<16x16xf32> to vector<16x1xf32>
    %84 = vector.extract_strided_slice %30 {offsets = [8, 0], sizes = [1, 128], strides = [1, 1]} : vector<16x128xf32> to vector<1x128xf32>
    %85 = vector.broadcast %83 : vector<16x1xf32> to vector<16x128xf32>
    %86 = vector.broadcast %84 : vector<1x128xf32> to vector<16x128xf32>
    %87 = arith.mulf %85, %86 : vector<16x128xf32>
    %88 = arith.addf %82, %87 : vector<16x128xf32>
    %89 = vector.extract_strided_slice %31 {offsets = [0, 9], sizes = [16, 1], strides = [1, 1]} : vector<16x16xf32> to vector<16x1xf32>
    %90 = vector.extract_strided_slice %30 {offsets = [9, 0], sizes = [1, 128], strides = [1, 1]} : vector<16x128xf32> to vector<1x128xf32>
    %91 = vector.broadcast %89 : vector<16x1xf32> to vector<16x128xf32>
    %92 = vector.broadcast %90 : vector<1x128xf32> to vector<16x128xf32>
    %93 = arith.mulf %91, %92 : vector<16x128xf32>
    %94 = arith.addf %88, %93 : vector<16x128xf32>
    %95 = vector.extract_strided_slice %31 {offsets = [0, 10], sizes = [16, 1], strides = [1, 1]} : vector<16x16xf32> to vector<16x1xf32>
    %96 = vector.extract_strided_slice %30 {offsets = [10, 0], sizes = [1, 128], strides = [1, 1]} : vector<16x128xf32> to vector<1x128xf32>
    %97 = vector.broadcast %95 : vector<16x1xf32> to vector<16x128xf32>
    %98 = vector.broadcast %96 : vector<1x128xf32> to vector<16x128xf32>
    %99 = arith.mulf %97, %98 : vector<16x128xf32>
    %100 = arith.addf %94, %99 : vector<16x128xf32>
    %101 = vector.extract_strided_slice %31 {offsets = [0, 11], sizes = [16, 1], strides = [1, 1]} : vector<16x16xf32> to vector<16x1xf32>
    %102 = vector.extract_strided_slice %30 {offsets = [11, 0], sizes = [1, 128], strides = [1, 1]} : vector<16x128xf32> to vector<1x128xf32>
    %103 = vector.broadcast %101 : vector<16x1xf32> to vector<16x128xf32>
    %104 = vector.broadcast %102 : vector<1x128xf32> to vector<16x128xf32>
    %105 = arith.mulf %103, %104 : vector<16x128xf32>
    %106 = arith.addf %100, %105 : vector<16x128xf32>
    %107 = vector.extract_strided_slice %31 {offsets = [0, 12], sizes = [16, 1], strides = [1, 1]} : vector<16x16xf32> to vector<16x1xf32>
    %108 = vector.extract_strided_slice %30 {offsets = [12, 0], sizes = [1, 128], strides = [1, 1]} : vector<16x128xf32> to vector<1x128xf32>
    %109 = vector.broadcast %107 : vector<16x1xf32> to vector<16x128xf32>
    %110 = vector.broadcast %108 : vector<1x128xf32> to vector<16x128xf32>
    %111 = arith.mulf %109, %110 : vector<16x128xf32>
    %112 = arith.addf %106, %111 : vector<16x128xf32>
    %113 = vector.extract_strided_slice %31 {offsets = [0, 13], sizes = [16, 1], strides = [1, 1]} : vector<16x16xf32> to vector<16x1xf32>
    %114 = vector.extract_strided_slice %30 {offsets = [13, 0], sizes = [1, 128], strides = [1, 1]} : vector<16x128xf32> to vector<1x128xf32>
    %115 = vector.broadcast %113 : vector<16x1xf32> to vector<16x128xf32>
    %116 = vector.broadcast %114 : vector<1x128xf32> to vector<16x128xf32>
    %117 = arith.mulf %115, %116 : vector<16x128xf32>
    %118 = arith.addf %112, %117 : vector<16x128xf32>
    %119 = vector.extract_strided_slice %31 {offsets = [0, 14], sizes = [16, 1], strides = [1, 1]} : vector<16x16xf32> to vector<16x1xf32>
    %120 = vector.extract_strided_slice %30 {offsets = [14, 0], sizes = [1, 128], strides = [1, 1]} : vector<16x128xf32> to vector<1x128xf32>
    %121 = vector.broadcast %119 : vector<16x1xf32> to vector<16x128xf32>
    %122 = vector.broadcast %120 : vector<1x128xf32> to vector<16x128xf32>
    %123 = arith.mulf %121, %122 : vector<16x128xf32>
    %124 = arith.addf %118, %123 : vector<16x128xf32>
    %125 = vector.extract_strided_slice %31 {offsets = [0, 15], sizes = [16, 1], strides = [1, 1]} : vector<16x16xf32> to vector<16x1xf32>
    %126 = vector.extract_strided_slice %30 {offsets = [15, 0], sizes = [1, 128], strides = [1, 1]} : vector<16x128xf32> to vector<1x128xf32>
    %127 = vector.broadcast %125 : vector<16x1xf32> to vector<16x128xf32>
    %128 = vector.broadcast %126 : vector<1x128xf32> to vector<16x128xf32>
    %129 = arith.mulf %127, %128 : vector<16x128xf32>
    %130 = arith.addf %124, %129 : vector<16x128xf32>
    %cst_9 = arith.constant 0.000000e+00 : f32
    %131 = vector.broadcast %cst_9 : f32 to vector<16x128xf32>
    %132 = arith.maximumf %130, %131 : vector<16x128xf32>
    %c0_10 = arith.constant 0 : index
    %c0_11 = arith.constant 0 : index
    %133 = vector.load %arg6[%c0_10, %c0_11] : memref<2x16xf32, #tpu.memory_space<vmem>>, vector<2x16xf32>
    %c0_12 = arith.constant 0 : index
    %c0_13 = arith.constant 0 : index
    %134 = vector.load %arg7[%c0_12, %c0_13] : memref<2x1xf32, #tpu.memory_space<vmem>>, vector<2x1xf32>
    %135 = vector.shape_cast %134 : vector<2x1xf32> to vector<2x1xf32>
    %136 = vector.broadcast %135 : vector<2x1xf32> to vector<2x128xf32>
    %137 = vector.extract_strided_slice %133 {offsets = [0, 0], sizes = [2, 1], strides = [1, 1]} : vector<2x16xf32> to vector<2x1xf32>
    %138 = vector.extract_strided_slice %132 {offsets = [0, 0], sizes = [1, 128], strides = [1, 1]} : vector<16x128xf32> to vector<1x128xf32>
    %139 = vector.broadcast %137 : vector<2x1xf32> to vector<2x128xf32>
    %140 = vector.broadcast %138 : vector<1x128xf32> to vector<2x128xf32>
    %141 = arith.mulf %139, %140 : vector<2x128xf32>
    %142 = arith.addf %136, %141 : vector<2x128xf32>
    %143 = vector.extract_strided_slice %133 {offsets = [0, 1], sizes = [2, 1], strides = [1, 1]} : vector<2x16xf32> to vector<2x1xf32>
    %144 = vector.extract_strided_slice %132 {offsets = [1, 0], sizes = [1, 128], strides = [1, 1]} : vector<16x128xf32> to vector<1x128xf32>
    %145 = vector.broadcast %143 : vector<2x1xf32> to vector<2x128xf32>
    %146 = vector.broadcast %144 : vector<1x128xf32> to vector<2x128xf32>
    %147 = arith.mulf %145, %146 : vector<2x128xf32>
    %148 = arith.addf %142, %147 : vector<2x128xf32>
    %149 = vector.extract_strided_slice %133 {offsets = [0, 2], sizes = [2, 1], strides = [1, 1]} : vector<2x16xf32> to vector<2x1xf32>
    %150 = vector.extract_strided_slice %132 {offsets = [2, 0], sizes = [1, 128], strides = [1, 1]} : vector<16x128xf32> to vector<1x128xf32>
    %151 = vector.broadcast %149 : vector<2x1xf32> to vector<2x128xf32>
    %152 = vector.broadcast %150 : vector<1x128xf32> to vector<2x128xf32>
    %153 = arith.mulf %151, %152 : vector<2x128xf32>
    %154 = arith.addf %148, %153 : vector<2x128xf32>
    %155 = vector.extract_strided_slice %133 {offsets = [0, 3], sizes = [2, 1], strides = [1, 1]} : vector<2x16xf32> to vector<2x1xf32>
    %156 = vector.extract_strided_slice %132 {offsets = [3, 0], sizes = [1, 128], strides = [1, 1]} : vector<16x128xf32> to vector<1x128xf32>
    %157 = vector.broadcast %155 : vector<2x1xf32> to vector<2x128xf32>
    %158 = vector.broadcast %156 : vector<1x128xf32> to vector<2x128xf32>
    %159 = arith.mulf %157, %158 : vector<2x128xf32>
    %160 = arith.addf %154, %159 : vector<2x128xf32>
    %161 = vector.extract_strided_slice %133 {offsets = [0, 4], sizes = [2, 1], strides = [1, 1]} : vector<2x16xf32> to vector<2x1xf32>
    %162 = vector.extract_strided_slice %132 {offsets = [4, 0], sizes = [1, 128], strides = [1, 1]} : vector<16x128xf32> to vector<1x128xf32>
    %163 = vector.broadcast %161 : vector<2x1xf32> to vector<2x128xf32>
    %164 = vector.broadcast %162 : vector<1x128xf32> to vector<2x128xf32>
    %165 = arith.mulf %163, %164 : vector<2x128xf32>
    %166 = arith.addf %160, %165 : vector<2x128xf32>
    %167 = vector.extract_strided_slice %133 {offsets = [0, 5], sizes = [2, 1], strides = [1, 1]} : vector<2x16xf32> to vector<2x1xf32>
    %168 = vector.extract_strided_slice %132 {offsets = [5, 0], sizes = [1, 128], strides = [1, 1]} : vector<16x128xf32> to vector<1x128xf32>
    %169 = vector.broadcast %167 : vector<2x1xf32> to vector<2x128xf32>
    %170 = vector.broadcast %168 : vector<1x128xf32> to vector<2x128xf32>
    %171 = arith.mulf %169, %170 : vector<2x128xf32>
    %172 = arith.addf %166, %171 : vector<2x128xf32>
    %173 = vector.extract_strided_slice %133 {offsets = [0, 6], sizes = [2, 1], strides = [1, 1]} : vector<2x16xf32> to vector<2x1xf32>
    %174 = vector.extract_strided_slice %132 {offsets = [6, 0], sizes = [1, 128], strides = [1, 1]} : vector<16x128xf32> to vector<1x128xf32>
    %175 = vector.broadcast %173 : vector<2x1xf32> to vector<2x128xf32>
    %176 = vector.broadcast %174 : vector<1x128xf32> to vector<2x128xf32>
    %177 = arith.mulf %175, %176 : vector<2x128xf32>
    %178 = arith.addf %172, %177 : vector<2x128xf32>
    %179 = vector.extract_strided_slice %133 {offsets = [0, 7], sizes = [2, 1], strides = [1, 1]} : vector<2x16xf32> to vector<2x1xf32>
    %180 = vector.extract_strided_slice %132 {offsets = [7, 0], sizes = [1, 128], strides = [1, 1]} : vector<16x128xf32> to vector<1x128xf32>
    %181 = vector.broadcast %179 : vector<2x1xf32> to vector<2x128xf32>
    %182 = vector.broadcast %180 : vector<1x128xf32> to vector<2x128xf32>
    %183 = arith.mulf %181, %182 : vector<2x128xf32>
    %184 = arith.addf %178, %183 : vector<2x128xf32>
    %185 = vector.extract_strided_slice %133 {offsets = [0, 8], sizes = [2, 1], strides = [1, 1]} : vector<2x16xf32> to vector<2x1xf32>
    %186 = vector.extract_strided_slice %132 {offsets = [8, 0], sizes = [1, 128], strides = [1, 1]} : vector<16x128xf32> to vector<1x128xf32>
    %187 = vector.broadcast %185 : vector<2x1xf32> to vector<2x128xf32>
    %188 = vector.broadcast %186 : vector<1x128xf32> to vector<2x128xf32>
    %189 = arith.mulf %187, %188 : vector<2x128xf32>
    %190 = arith.addf %184, %189 : vector<2x128xf32>
    %191 = vector.extract_strided_slice %133 {offsets = [0, 9], sizes = [2, 1], strides = [1, 1]} : vector<2x16xf32> to vector<2x1xf32>
    %192 = vector.extract_strided_slice %132 {offsets = [9, 0], sizes = [1, 128], strides = [1, 1]} : vector<16x128xf32> to vector<1x128xf32>
    %193 = vector.broadcast %191 : vector<2x1xf32> to vector<2x128xf32>
    %194 = vector.broadcast %192 : vector<1x128xf32> to vector<2x128xf32>
    %195 = arith.mulf %193, %194 : vector<2x128xf32>
    %196 = arith.addf %190, %195 : vector<2x128xf32>
    %197 = vector.extract_strided_slice %133 {offsets = [0, 10], sizes = [2, 1], strides = [1, 1]} : vector<2x16xf32> to vector<2x1xf32>
    %198 = vector.extract_strided_slice %132 {offsets = [10, 0], sizes = [1, 128], strides = [1, 1]} : vector<16x128xf32> to vector<1x128xf32>
    %199 = vector.broadcast %197 : vector<2x1xf32> to vector<2x128xf32>
    %200 = vector.broadcast %198 : vector<1x128xf32> to vector<2x128xf32>
    %201 = arith.mulf %199, %200 : vector<2x128xf32>
    %202 = arith.addf %196, %201 : vector<2x128xf32>
    %203 = vector.extract_strided_slice %133 {offsets = [0, 11], sizes = [2, 1], strides = [1, 1]} : vector<2x16xf32> to vector<2x1xf32>
    %204 = vector.extract_strided_slice %132 {offsets = [11, 0], sizes = [1, 128], strides = [1, 1]} : vector<16x128xf32> to vector<1x128xf32>
    %205 = vector.broadcast %203 : vector<2x1xf32> to vector<2x128xf32>
    %206 = vector.broadcast %204 : vector<1x128xf32> to vector<2x128xf32>
    %207 = arith.mulf %205, %206 : vector<2x128xf32>
    %208 = arith.addf %202, %207 : vector<2x128xf32>
    %209 = vector.extract_strided_slice %133 {offsets = [0, 12], sizes = [2, 1], strides = [1, 1]} : vector<2x16xf32> to vector<2x1xf32>
    %210 = vector.extract_strided_slice %132 {offsets = [12, 0], sizes = [1, 128], strides = [1, 1]} : vector<16x128xf32> to vector<1x128xf32>
    %211 = vector.broadcast %209 : vector<2x1xf32> to vector<2x128xf32>
    %212 = vector.broadcast %210 : vector<1x128xf32> to vector<2x128xf32>
    %213 = arith.mulf %211, %212 : vector<2x128xf32>
    %214 = arith.addf %208, %213 : vector<2x128xf32>
    %215 = vector.extract_strided_slice %133 {offsets = [0, 13], sizes = [2, 1], strides = [1, 1]} : vector<2x16xf32> to vector<2x1xf32>
    %216 = vector.extract_strided_slice %132 {offsets = [13, 0], sizes = [1, 128], strides = [1, 1]} : vector<16x128xf32> to vector<1x128xf32>
    %217 = vector.broadcast %215 : vector<2x1xf32> to vector<2x128xf32>
    %218 = vector.broadcast %216 : vector<1x128xf32> to vector<2x128xf32>
    %219 = arith.mulf %217, %218 : vector<2x128xf32>
    %220 = arith.addf %214, %219 : vector<2x128xf32>
    %221 = vector.extract_strided_slice %133 {offsets = [0, 14], sizes = [2, 1], strides = [1, 1]} : vector<2x16xf32> to vector<2x1xf32>
    %222 = vector.extract_strided_slice %132 {offsets = [14, 0], sizes = [1, 128], strides = [1, 1]} : vector<16x128xf32> to vector<1x128xf32>
    %223 = vector.broadcast %221 : vector<2x1xf32> to vector<2x128xf32>
    %224 = vector.broadcast %222 : vector<1x128xf32> to vector<2x128xf32>
    %225 = arith.mulf %223, %224 : vector<2x128xf32>
    %226 = arith.addf %220, %225 : vector<2x128xf32>
    %227 = vector.extract_strided_slice %133 {offsets = [0, 15], sizes = [2, 1], strides = [1, 1]} : vector<2x16xf32> to vector<2x1xf32>
    %228 = vector.extract_strided_slice %132 {offsets = [15, 0], sizes = [1, 128], strides = [1, 1]} : vector<16x128xf32> to vector<1x128xf32>
    %229 = vector.broadcast %227 : vector<2x1xf32> to vector<2x128xf32>
    %230 = vector.broadcast %228 : vector<1x128xf32> to vector<2x128xf32>
    %231 = arith.mulf %229, %230 : vector<2x128xf32>
    %232 = arith.addf %226, %231 : vector<2x128xf32>
    %c0_14 = arith.constant 0 : index
    %c0_15 = arith.constant 0 : index
    %233 = vector.load %arg8[%c0_14, %c0_15] : memref<2x128xf32, #tpu.memory_space<vmem>>, vector<2x128xf32>
    tpu.vector_store %arg8[%c0_14, %c0_15], %232 {strides = array<i32>} : memref<2x128xf32, #tpu.memory_space<vmem>>, vector<2x128xf32>,
    return
  }
  func.func @transform_0(%arg0: i32) -> (i32, i32) {
    %c0_i32 = arith.constant 0 : i32
    %c0_i32_0 = arith.constant 0 : i32
    return %c0_i32, %arg0 : i32, i32
  }
  func.func @transform_1(%arg0: i32) -> (i32, i32) {
    %c0_i32 = arith.constant 0 : i32
    %c0_i32_0 = arith.constant 0 : i32
    %c0_i32_1 = arith.constant 0 : i32
    return %c0_i32, %c0_i32_0 : i32, i32
  }
  func.func @transform_2(%arg0: i32) -> (i32, i32) {
    %c0_i32 = arith.constant 0 : i32
    %c0_i32_0 = arith.constant 0 : i32
    %c0_i32_1 = arith.constant 0 : i32
    return %c0_i32, %c0_i32_0 : i32, i32
  }
  func.func @transform_3(%arg0: i32) -> (i32, i32) {
    %c0_i32 = arith.constant 0 : i32
    %c0_i32_0 = arith.constant 0 : i32
    %c0_i32_1 = arith.constant 0 : i32
    return %c0_i32, %c0_i32_0 : i32, i32
  }
  func.func @transform_4(%arg0: i32) -> (i32, i32) {
    %c0_i32 = arith.constant 0 : i32
    %c0_i32_0 = arith.constant 0 : i32
    %c0_i32_1 = arith.constant 0 : i32
    return %c0_i32, %c0_i32_0 : i32, i32
  }
  func.func @transform_5(%arg0: i32) -> (i32, i32) {
    %c0_i32 = arith.constant 0 : i32
    %c0_i32_0 = arith.constant 0 : i32
    %c0_i32_1 = arith.constant 0 : i32
    return %c0_i32, %c0_i32_0 : i32, i32
  }
  func.func @transform_6(%arg0: i32) -> (i32, i32) {
    %c0_i32 = arith.constant 0 : i32
    %c0_i32_0 = arith.constant 0 : i32
    %c0_i32_1 = arith.constant 0 : i32
    return %c0_i32, %c0_i32_0 : i32, i32
  }
  func.func @transform_7(%arg0: i32) -> (i32, i32) {
    %c0_i32 = arith.constant 0 : i32
    %c0_i32_0 = arith.constant 0 : i32
    return %c0_i32, %arg0 : i32, i32
  }
}

</mosaic_0001>

<bundles_post_ra>
// kernel: qnet_forward.1
= control target key start
LH: loop header
LB: loop body
LE: loop exit
PB: predicated region body
PF: predicated region fallthrough
CT: control target
= control target key end

     0   :  { %v520_v0 = vmov 1   ;;  %v521_v1 = vmov 0   ;;  %v522_v7 = vmov 3   ;;  %v523_v8 = vmov 2   ;;  %s739_s2 = inlined_call_operand.vmem [shape: f32[16,1], index: 2, kind: input, shape index: {}]   ;;  %s740_s1 = inlined_call_operand.vmem [shape: f32[16,4], index: 1, kind: input, shape index: {}]   ;;  %s741_s4 = inlined_call_operand.vmem [shape: f32[16,1], index: 4, kind: input, shape index: {}]   ;;  %s742_s3 = inlined_call_operand.vmem [shape: f32[16,16], index: 3, kind: input, shape index: {}]   ;;  %s743_s5 = inlined_call_operand.vmem [shape: f32[2,16], index: 5, kind: input, shape index: {}]   ;;  %s744_s0 = inlined_call_operand.vmem [shape: f32[4,128], index: 0, kind: input, shape index: {}]   ;;  %s745_s6 = inlined_call_operand.vmem [shape: f32[2,1], index: 6, kind: input, shape index: {}]   ;;  %s746_s7 = inlined_call_operand.vmem [shape: f32[2,128], index: 7, kind: output, shape index: {}]  }
   0x1   :  { %466 = vset.pattern.permute.xlu2 %v520_v0  ;;  %465 = vset.pattern.permute.xlu1 %v521_v1  ;;  %v29_v2 = vld [vmem:[%s739_s2] sm:$0xff]  ;;  %v28_v4 = vld [vmem:[%s740_s1 + $0x8] sm:$0xff]  ;;  %v524_v12 = vmov 4   ;;  %v525_v13 = vmov 7   ;;  %v526_v14 = vmov 9   ;;  %v527_v15 = vmov 12  }
   0x2   :  { %v27_v3 = vld [vmem:[%s740_s1] sm:$0xff]  ;;  %464 = vset.pattern.permute.xlu0 %v521_v1  ;;  %v30_v5 = vld [vmem:[%s739_s2 + $0x8] sm:$0xff]  ;;  %v528_v16 = vmov 5   ;;  %v529_v17 = vmov 14   ;;  %v530_v18 = vmov 6   ;;  %v531_v19 = vmov 8  }
   0x3   :  { %57 = vperm.xlu2 %466, %v27_v3   ;;  %33 = vperm.xlu0 %464, %v29_v2   ;;  %v100_v6 = vld [vmem:[%s741_s4 + $0x8] sm:$0xff]  ;;  %v99_v9 = vld [vmem:[%s741_s4] sm:$0xff]  ;;  %v532_v23 = vmov 10   ;;  %v533_v28 = vmov 11   ;;  %v534_v38 = vmov 15   ;;  %v535_v40 = vmov 13  }
   0x4   :  { %43 = vperm.xlu1 %465, %v27_v3   ;;  %v605_v10 = vld [vmem:[%s742_s3] sm:$0xff]  ;;  %v610_v11 = vld [vmem:[%s742_s3 + $0x8] sm:$0xff] }
   0x5   :  { %v652_v21 = vld [vmem:[%s743_s5] sm:$0x3] }
   0x6   :  { %v26_v25 = vld [vmem:[%s744_s0] sm:$0xf] }
   0x7   :  { %v64_v26 = vperm.slane %v26_v25, 1  ;;  %v51_v27 = vperm.slane %v26_v25, 0  ;;  %v77_v45 = vperm.slane %v26_v25, 2  ;;  %v90_v51 = vperm.slane %v26_v25, 3 }
   0xb   :  { %61 = vperm.xlu2 %466, %v28_v4   ;;  %38 = vperm.xlu0 %464, %v30_v5  }
   0xc   :  { %48 = vperm.xlu1 %465, %v28_v4  }
  0x13   :  { %468 = vset.pattern.permute.xlu2 %v522_v7  ;;  %108 = vperm.xlu0 %464, %v100_v6   ;;  %v324_v6 = vld [vmem:[%s745_s6] sm:$0x3] }
  0x14   :  { %467 = vset.pattern.permute.xlu1 %v523_v8  ;;  %83 = vperm.xlu2 %468, %v27_v3  }
  0x15   :  { %74 = vperm.xlu1 %467, %v28_v4  }
  0x1b   :  { %471 = vset.pattern.permute.xlu0 %v523_v8 }
  0x1c   :  { %70 = vperm.xlu0 %471, %v27_v3   ;;  %470 = vset.pattern.permute.xlu2 %v521_v1 }
  0x1d   :  { %469 = vset.pattern.permute.xlu1 %v522_v7  ;;  %103 = vperm.xlu2 %470, %v99_v9  }
  0x1e   :  { %87 = vperm.xlu1 %469, %v28_v4  }
  0x24   :  { %140 = vperm.xlu0 %471, %v605_v10  }
  0x25   :  { %118 = vperm.xlu2 %470, %v610_v11  }
  0x26   :  { %472 = vset.pattern.permute.xlu1 %v521_v1 }
  0x27   :  { %113 = vperm.xlu1 %472, %v605_v10  }
  0x2c   :  { %479 = vset.pattern.permute.xlu0 %v524_v12 }
  0x2d   :  { %170 = vperm.xlu0 %479, %v610_v11   ;;  %474 = vset.pattern.permute.xlu2 %v520_v0 }
  0x2e   :  { %131 = vperm.xlu2 %474, %v610_v11  }
  0x2f   :  { %473 = vset.pattern.permute.xlu1 %v520_v0 }
  0x30   :  { %127 = vperm.xlu1 %473, %v605_v10  }
  0x35   :  { %484 = vset.pattern.permute.xlu0 %v525_v13 }
  0x36   :  { %205 = vperm.xlu0 %484, %v605_v10   ;;  %476 = vset.pattern.permute.xlu2 %v522_v7 }
  0x37   :  { %153 = vperm.xlu2 %476, %v605_v10  }
  0x38   :  { %475 = vset.pattern.permute.xlu1 %v523_v8 }
  0x39   :  { %144 = vperm.xlu1 %475, %v610_v11  }
  0x3e   :  { %489 = vset.pattern.permute.xlu0 %v526_v14 }
  0x3f   :  { %235 = vperm.xlu0 %489, %v610_v11   ;;  %478 = vset.pattern.permute.xlu2 %v524_v12 }
  0x40   :  { %166 = vperm.xlu2 %478, %v605_v10  }
  0x41   :  { %477 = vset.pattern.permute.xlu1 %v522_v7 }
  0x42   :  { %157 = vperm.xlu1 %477, %v610_v11  }
  0x47   :  { %494 = vset.pattern.permute.xlu0 %v527_v15 }
  0x48   :  { %270 = vperm.xlu0 %494, %v605_v10   ;;  %481 = vset.pattern.permute.xlu2 %v528_v16 }
  0x49   :  { %183 = vperm.xlu2 %481, %v610_v11  }
  0x4a   :  { %480 = vset.pattern.permute.xlu1 %v528_v16 }
  0x4b   :  { %179 = vperm.xlu1 %480, %v605_v10  }
  0x50   :  { %499 = vset.pattern.permute.xlu0 %v529_v17 }
  0x51   :  { %300 = vperm.xlu0 %499, %v610_v11   ;;  %483 = vset.pattern.permute.xlu2 %v530_v18 }
  0x52   :  { %196 = vperm.xlu2 %483, %v610_v11  }
  0x53   :  { %482 = vset.pattern.permute.xlu1 %v530_v18 }
  0x54   :  { %192 = vperm.xlu1 %482, %v605_v10  }
  0x59   :  { %504 = vset.pattern.permute.xlu0 %v520_v0 }
  0x5a   :  { %486 = vset.pattern.permute.xlu2 %v531_v19  ;;  %339 = vperm.xlu0 %504, %v652_v21  }
  0x5b   :  { %218 = vperm.xlu2 %486, %v605_v10  }
  0x5c   :  { %485 = vset.pattern.permute.xlu1 %v525_v13 }
  0x5d   :  { %v58_v20 = vpop.permute.xlu2 %57  ;;  %209 = vperm.xlu1 %485, %v610_v11  }
  0x5e   :  { %v65_v31 = vmul.f32 %v64_v26, %v58_v20 }
  0x62   :  { %509 = vset.pattern.permute.xlu0 %v530_v18 }
  0x63   :  { %488 = vset.pattern.permute.xlu2 %v526_v14  ;;  %374 = vperm.xlu0 %509, %v652_v21  }
  0x64   :  { %231 = vperm.xlu2 %488, %v605_v10  }
  0x65   :  { %v62_v22 = vpop.permute.xlu2 %61  ;;  %487 = vset.pattern.permute.xlu1 %v531_v19 }
  0x66   :  { %222 = vperm.xlu1 %487, %v610_v11   ;;  %v66_v42 = vmul.f32 %v64_v26, %v62_v22 }
  0x6b   :  { %514 = vset.pattern.permute.xlu0 %v533_v28 }
  0x6c   :  { %491 = vset.pattern.permute.xlu2 %v532_v23  ;;  %409 = vperm.xlu0 %514, %v652_v21  }
  0x6d   :  { %248 = vperm.xlu2 %491, %v610_v11  }
  0x6e   :  { %490 = vset.pattern.permute.xlu1 %v532_v23  ;;  %v84_v24 = vpop.permute.xlu2 %83 }
  0x6f   :  { %244 = vperm.xlu1 %490, %v605_v10   ;;  %v91_v55 = vmul.f32 %v90_v51, %v84_v24 }
  0x74   :  { %519 = vset.pattern.permute.xlu0 %v534_v38 }
  0x75   :  { %493 = vset.pattern.permute.xlu2 %v533_v28  ;;  %v34_v30 = vpop.permute.xlu0 %33 }
  0x76   :  { %v44_v29 = vpop.permute.xlu1 %43  ;;  %261 = vperm.xlu2 %493, %v610_v11  }
  0x77   :  { %v52_v32 = vmul.f32 %v51_v27, %v44_v29  ;;  %492 = vset.pattern.permute.xlu1 %v533_v28  ;;  %v104_v33 = vpop.permute.xlu2 %103 }
  0x78   :  { %257 = vperm.xlu1 %492, %v605_v10  }
  0x79   :  { %v54_v34 = vadd.f32 %v52_v32, %v34_v30 }
  0x7b   :  { %v67_v35 = vadd.f32 %v65_v31, %v54_v34 }
  0x7d   :  { %v39_v37 = vpop.permute.xlu0 %38 }
  0x7e   :  { %v49_v36 = vpop.permute.xlu1 %48  ;;  %496 = vset.pattern.permute.xlu2 %v535_v40 }
  0x7f   :  { %v53_v39 = vmul.f32 %v51_v27, %v49_v36  ;;  %283 = vperm.xlu2 %496, %v605_v10   ;;  %v119_v41 = vpop.permute.xlu2 %118 }
  0x80   :  { %495 = vset.pattern.permute.xlu1 %v527_v15 }
  0x81   :  { %v55_v43 = vadd.f32 %v53_v39, %v39_v37  ;;  %274 = vperm.xlu1 %495, %v610_v11  }
  0x83   :  { %v68_v44 = vadd.f32 %v66_v42, %v55_v43 }
  0x85   :  { %v109_v46 = vpop.permute.xlu0 %108 }
  0x87   :  { %v75_v47 = vpop.permute.xlu1 %74  ;;  %498 = vset.pattern.permute.xlu2 %v529_v17 }
  0x88   :  { %v79_v48 = vmul.f32 %v77_v45, %v75_v47  ;;  %296 = vperm.xlu2 %498, %v605_v10   ;;  %v132_v49 = vpop.permute.xlu2 %131 }
  0x89   :  { %497 = vset.pattern.permute.xlu1 %v535_v40 }
  0x8a   :  { %v81_v50 = vadd.f32 %v79_v48, %v68_v44  ;;  %287 = vperm.xlu1 %497, %v610_v11  }
  0x8e   :  { %v71_v52 = vpop.permute.xlu0 %70 }
  0x8f   :  { %v78_v53 = vmul.f32 %v77_v45, %v71_v52 }
  0x90   :  { %v88_v54 = vpop.permute.xlu1 %87  ;;  %501 = vset.pattern.permute.xlu2 %v534_v38 }
  0x91   :  { %v80_v56 = vadd.f32 %v78_v53, %v67_v35  ;;  %v92_v57 = vmul.f32 %v90_v51, %v88_v54  ;;  %313 = vperm.xlu2 %501, %v610_v11   ;;  %v154_v58 = vpop.permute.xlu2 %153 }
  0x92   :  { %500 = vset.pattern.permute.xlu1 %v534_v38 }
  0x93   :  { %v93_v59 = vadd.f32 %v91_v55, %v80_v56  ;;  %v682_v60 = vadd.f32 %v92_v57, %v81_v50  ;;  %309 = vperm.xlu1 %500, %v605_v10  }
  0x95   :  { %v685_v61 = vmax.f32 %v93_v59, 0.0 }
  0x96   :  { %v141_v26 = vpop.permute.xlu0 %140 }
  0x97   :  { %v160_v62 = vperm.slane %v685_v61, 3  ;;  %v121_v63 = vperm.slane %v685_v61, 0  ;;  %v134_v0 = vperm.slane %v685_v61, 1  ;;  %v173_v5 = vperm.slane %v685_v61, 4 }
  0x98   :  { %v147_v25 = vperm.slane %v685_v61, 2  ;;  %v186_v28 = vperm.slane %v685_v61, 5  ;;  %v212_v54 = vperm.slane %v685_v61, 7 }
  0x99   :  { %v161_v2 = vmul.f32 %v160_v62, %v154_v58  ;;  %v114_v3 = vpop.permute.xlu1 %113  ;;  %v123_v4 = vmul.f32 %v121_v63, %v119_v41  ;;  %503 = vset.pattern.permute.xlu2 %v521_v1  ;;  %v136_v11 = vmul.f32 %v134_v0, %v132_v49 }
  0x9a   :  { %v122_v9 = vmul.f32 %v121_v63, %v114_v3  ;;  %332 = vperm.xlu2 %503, %v652_v21   ;;  %v167_v10 = vpop.permute.xlu2 %166 }
  0x9b   :  { %v174_v18 = vmul.f32 %v173_v5, %v167_v10  ;;  %502 = vset.pattern.permute.xlu1 %v521_v1  ;;  %v125_v20 = vadd.f32 %v123_v4, %v109_v46  ;;  %v148_v1 = vmul.f32 %v147_v25, %v141_v26 }
  0x9c   :  { %v124_v22 = vadd.f32 %v122_v9, %v104_v33  ;;  %327 = vperm.xlu1 %502, %v324_v6  }
  0x9d   :  { %v138_v24 = vadd.f32 %v136_v11, %v125_v20 }
  0x9f   :  { %v171_v42 = vpop.permute.xlu0 %170 }
  0xa2   :  { %v128_v27 = vpop.permute.xlu1 %127  ;;  %506 = vset.pattern.permute.xlu2 %v522_v7  ;;  %v199_v7 = vperm.slane %v685_v61, 6 }
  0xa3   :  { %v135_v29 = vmul.f32 %v134_v0, %v128_v27  ;;  %353 = vperm.xlu2 %506, %v652_v21   ;;  %v184_v30 = vpop.permute.xlu2 %183 }
  0xa4   :  { %v188_v31 = vmul.f32 %v186_v28, %v184_v30  ;;  %505 = vset.pattern.permute.xlu1 %v523_v8 }
  0xa5   :  { %v137_v32 = vadd.f32 %v135_v29, %v124_v22  ;;  %346 = vperm.xlu1 %505, %v652_v21  }
  0xa7   :  { %v150_v33 = vadd.f32 %v148_v1, %v137_v32 }
  0xa8   :  { %v206_v51 = vpop.permute.xlu0 %205 }
  0xa9   :  { %v163_v34 = vadd.f32 %v161_v2, %v150_v33  ;;  %v213_v55 = vmul.f32 %v212_v54, %v206_v51 }
  0xab   :  { %v145_v35 = vpop.permute.xlu1 %144  ;;  %508 = vset.pattern.permute.xlu2 %v528_v16  ;;  %v176_v36 = vadd.f32 %v174_v18, %v163_v34  ;;  %v175_v16 = vmul.f32 %v173_v5, %v171_v42 }
  0xac   :  { %v149_v37 = vmul.f32 %v147_v25, %v145_v35  ;;  %367 = vperm.xlu2 %508, %v652_v21   ;;  %v197_v39 = vpop.permute.xlu2 %196 }
  0xad   :  { %v201_v41 = vmul.f32 %v199_v7, %v197_v39  ;;  %507 = vset.pattern.permute.xlu1 %v524_v12 }
  0xae   :  { %v151_v8 = vadd.f32 %v149_v37, %v138_v24  ;;  %360 = vperm.xlu1 %507, %v652_v21  }
  0xb1   :  { %v236_v2 = vpop.permute.xlu0 %235 }
  0xb4   :  { %v158_v43 = vpop.permute.xlu1 %157  ;;  %511 = vset.pattern.permute.xlu2 %v531_v19 }
  0xb5   :  { %v162_v44 = vmul.f32 %v160_v62, %v158_v43  ;;  %388 = vperm.xlu2 %511, %v652_v21   ;;  %v219_v48 = vpop.permute.xlu2 %218 }
  0xb6   :  { %510 = vset.pattern.permute.xlu1 %v525_v13  ;;  %v717_v13 = vmax.f32 %v682_v60, 0.0 }
  0xb7   :  { %v164_v45 = vadd.f32 %v162_v44, %v151_v8  ;;  %381 = vperm.xlu1 %510, %v652_v21  }
  0xb8   :  { %v238_v57 = vperm.slane %v717_v13, 1  ;;  %v251_v9 = vperm.slane %v717_v13, 2  ;;  %v277_v29 = vperm.slane %v717_v13, 4  ;;  %v290_v1 = vperm.slane %v717_v13, 5 }
  0xb9   :  { %v177_v46 = vadd.f32 %v175_v16, %v164_v45  ;;  %v303_v34 = vperm.slane %v717_v13, 6 }
  0xba   :  { %v240_v6 = vmul.f32 %v238_v57, %v236_v2 }
  0xbb   :  { %v190_v47 = vadd.f32 %v188_v31, %v177_v46 }
  0xbd   :  { %v180_v12 = vpop.permute.xlu1 %179  ;;  %513 = vset.pattern.permute.xlu2 %v532_v23  ;;  %v203_v49 = vadd.f32 %v201_v41, %v190_v47  ;;  %v316_v47 = vperm.slane %v717_v13, 7 }
  0xbe   :  { %v187_v50 = vmul.f32 %v186_v28, %v180_v12  ;;  %402 = vperm.xlu2 %513, %v652_v21   ;;  %v232_v52 = vpop.permute.xlu2 %231 }
  0xbf   :  { %512 = vset.pattern.permute.xlu1 %v526_v14  ;;  %v225_v14 = vperm.slane %v717_v13, 0  ;;  %v239_v60 = vmul.f32 %v238_v57, %v232_v52 }
  0xc0   :  { %v189_v19 = vadd.f32 %v187_v50, %v176_v36  ;;  %395 = vperm.xlu1 %512, %v652_v21  }
  0xc1   :  { %v226_v58 = vmul.f32 %v225_v14, %v219_v48 }
  0xc6   :  { %v193_v53 = vpop.permute.xlu1 %192  ;;  %516 = vset.pattern.permute.xlu2 %v535_v40 }
  0xc7   :  { %v200_v23 = vmul.f32 %v199_v7, %v193_v53  ;;  %423 = vperm.xlu2 %516, %v652_v21   ;;  %v249_v63 = vpop.permute.xlu2 %248 }
  0xc8   :  { %515 = vset.pattern.permute.xlu1 %v527_v15  ;;  %v253_v11 = vmul.f32 %v251_v9, %v249_v63 }
  0xc9   :  { %v202_v56 = vadd.f32 %v200_v23, %v189_v19  ;;  %416 = vperm.xlu1 %515, %v652_v21  }
  0xcb   :  { %v215_v59 = vadd.f32 %v213_v55, %v202_v56 }
  0xcd   :  { %v228_v62 = vadd.f32 %v226_v58, %v215_v59 }
  0xcf   :  { %v210_v40 = vpop.permute.xlu1 %209  ;;  %518 = vset.pattern.permute.xlu2 %v534_v38  ;;  %v241_v61 = vadd.f32 %v239_v60, %v228_v62  ;;  %v264_v38 = vperm.slane %v717_v13, 3 }
  0xd0   :  { %v214_v0 = vmul.f32 %v212_v54, %v210_v40  ;;  %437 = vperm.xlu2 %518, %v652_v21   ;;  %v262_v5 = vpop.permute.xlu2 %261 }
  0xd1   :  { %517 = vset.pattern.permute.xlu1 %v529_v17  ;;  %v266_v20 = vmul.f32 %v264_v38, %v262_v5 }
  0xd2   :  { %v216_v15 = vadd.f32 %v214_v0, %v203_v49  ;;  %430 = vperm.xlu1 %517, %v652_v21   ;;  %v271_v21 = vpop.permute.xlu0 %270 }
  0xd3   :  { %v278_v31 = vmul.f32 %v277_v29, %v271_v21 }
  0xd8   :  { %v223_v3 = vpop.permute.xlu1 %222 }
  0xd9   :  { %v227_v4 = vmul.f32 %v225_v14, %v223_v3  ;;  %v284_v26 = vpop.permute.xlu2 %283 }
  0xda   :  { %v291_v35 = vmul.f32 %v290_v1, %v284_v26  ;;  %v301_v43 = vpop.permute.xlu0 %300 }
  0xdb   :  { %v229_v10 = vadd.f32 %v227_v4, %v216_v15  ;;  %v305_v46 = vmul.f32 %v303_v34, %v301_v43 }
  0xdd   :  { %v242_v18 = vadd.f32 %v240_v6, %v229_v10 }
  0xdf   :  { %v255_v22 = vadd.f32 %v253_v11, %v242_v18 }
  0xe1   :  { %v245_v24 = vpop.permute.xlu1 %244  ;;  %v268_v25 = vadd.f32 %v266_v20, %v255_v22 }
  0xe2   :  { %v252_v17 = vmul.f32 %v251_v9, %v245_v24  ;;  %v297_v33 = vpop.permute.xlu2 %296  ;;  %v340_v62 = vpop.permute.xlu0 %339 }
  0xe3   :  { %v304_v36 = vmul.f32 %v303_v34, %v297_v33 }
  0xe4   :  { %v254_v27 = vadd.f32 %v252_v17, %v241_v61 }
  0xea   :  { %v258_v28 = vpop.permute.xlu1 %257  ;;  %v375_v24 = vpop.permute.xlu0 %374 }
  0xeb   :  { %v265_v30 = vmul.f32 %v264_v38, %v258_v28  ;;  %v314_v45 = vpop.permute.xlu2 %313 }
  0xec   :  { %v318_v12 = vmul.f32 %v316_v47, %v314_v45 }
  0xed   :  { %v267_v32 = vadd.f32 %v265_v30, %v254_v27 }
  0xef   :  { %v280_v7 = vadd.f32 %v278_v31, %v267_v32 }
  0xf1   :  { %v293_v37 = vadd.f32 %v291_v35, %v280_v7 }
  0xf3   :  { %v275_v39 = vpop.permute.xlu1 %274  ;;  %v306_v41 = vadd.f32 %v304_v36, %v293_v37  ;;  %v410_v36 = vpop.permute.xlu0 %409 }
  0xf4   :  { %v279_v8 = vmul.f32 %v277_v29, %v275_v39  ;;  %v333_v52 = vpop.permute.xlu2 %332 }
  0xf6   :  { %v281_v42 = vadd.f32 %v279_v8, %v268_v25 }
  0xfc   :  { %v288_v44 = vpop.permute.xlu1 %287 }
  0xfd   :  { %v292_v16 = vmul.f32 %v290_v1, %v288_v44  ;;  %v354_v14 = vpop.permute.xlu2 %353 }
  0xff   :  { %v294_v48 = vadd.f32 %v292_v16, %v281_v42 }
 0x101   :  { %v307_v49 = vadd.f32 %v305_v46, %v294_v48 }
 0x103   :  { %v320_v50 = vadd.f32 %v318_v12, %v307_v49 }
 0x105   :  { %v310_v19 = vpop.permute.xlu1 %309  ;;  %v322_v18 = vmax.f32 %v320_v50, 0.0 }
 0x106   :  { %v317_v51 = vmul.f32 %v316_v47, %v310_v19  ;;  %v368_v0 = vpop.permute.xlu2 %367 }
 0x107   :  { %v391_v27 = vperm.slane %v322_v18, 0  ;;  %v398_v32 = vperm.slane %v322_v18, 1  ;;  %v412_v34 = vperm.slane %v322_v18, 3  ;;  %v405_v35 = vperm.slane %v322_v18, 2 }
 0x108   :  { %v319_v53 = vadd.f32 %v317_v51, %v306_v41  ;;  %v419_v44 = vperm.slane %v322_v18, 4  ;;  %v426_v45 = vperm.slane %v322_v18, 5  ;;  %v433_v49 = vperm.slane %v322_v18, 6 }
 0x109   :  { %v413_v41 = vmul.f32 %v412_v34, %v410_v36  ;;  %v440_v51 = vperm.slane %v322_v18, 7 }
 0x10a   :  { %v321_v54 = vmax.f32 %v319_v53, 0.0 }
 0x10c   :  { %v335_v55 = vperm.slane %v321_v54, 0  ;;  %v342_v57 = vperm.slane %v321_v54, 1  ;;  %v349_v60 = vperm.slane %v321_v54, 2  ;;  %v356_v63 = vperm.slane %v321_v54, 3 }
 0x10d   :  { %v363_v3 = vperm.slane %v321_v54, 4  ;;  %v370_v4 = vperm.slane %v321_v54, 5  ;;  %v377_v38 = vperm.slane %v321_v54, 6  ;;  %v384_v17 = vperm.slane %v321_v54, 7 }
 0x10e   :  { %v328_v23 = vpop.permute.xlu1 %327  ;;  %v336_v56 = vmul.f32 %v335_v55, %v333_v52  ;;  %v343_v40 = vmul.f32 %v342_v57, %v340_v62  ;;  %v357_v2 = vmul.f32 %v356_v63, %v354_v14 }
 0x10f   :  { %v371_v11 = vmul.f32 %v370_v4, %v368_v0  ;;  %v389_v20 = vpop.permute.xlu2 %388  ;;  %v378_v25 = vmul.f32 %v377_v38, %v375_v24 }
 0x110   :  { %v337_v58 = vadd.f32 %v336_v56, %v328_v23  ;;  %v392_v29 = vmul.f32 %v391_v27, %v389_v20 }
 0x112   :  { %v344_v61 = vadd.f32 %v343_v40, %v337_v58 }
 0x117   :  { %v347_v59 = vpop.permute.xlu1 %346 }
 0x118   :  { %v350_v13 = vmul.f32 %v349_v60, %v347_v59  ;;  %v403_v1 = vpop.permute.xlu2 %402 }
 0x119   :  { %v406_v37 = vmul.f32 %v405_v35, %v403_v1 }
 0x11a   :  { %v351_v15 = vadd.f32 %v350_v13, %v344_v61 }
 0x11c   :  { %v358_v6 = vadd.f32 %v357_v2, %v351_v15 }
 0x120   :  { %v361_v5 = vpop.permute.xlu1 %360 }
 0x121   :  { %v364_v9 = vmul.f32 %v363_v3, %v361_v5  ;;  %v424_v43 = vpop.permute.xlu2 %423 }
 0x122   :  { %v427_v47 = vmul.f32 %v426_v45, %v424_v43 }
 0x123   :  { %v365_v10 = vadd.f32 %v364_v9, %v358_v6 }
 0x125   :  { %v372_v22 = vadd.f32 %v371_v11, %v365_v10 }
 0x127   :  { %v379_v21 = vadd.f32 %v378_v25, %v372_v22 }
 0x129   :  { %v382_v26 = vpop.permute.xlu1 %381 }
 0x12a   :  { %v385_v28 = vmul.f32 %v384_v17, %v382_v26  ;;  %v438_v50 = vpop.permute.xlu2 %437 }
 0x12b   :  { %v441_v53 = vmul.f32 %v440_v51, %v438_v50 }
 0x12c   :  { %v386_v30 = vadd.f32 %v385_v28, %v379_v21 }
 0x12e   :  { %v393_v31 = vadd.f32 %v392_v29, %v386_v30 }
 0x132   :  { %v396_v33 = vpop.permute.xlu1 %395 }
 0x133   :  { %v399_v7 = vmul.f32 %v398_v32, %v396_v33 }
 0x135   :  { %v400_v39 = vadd.f32 %v399_v7, %v393_v31 }
 0x137   :  { %v407_v8 = vadd.f32 %v406_v37, %v400_v39 }
 0x139   :  { %v414_v42 = vadd.f32 %v413_v41, %v407_v8 }
 0x13b   :  { %v417_v16 = vpop.permute.xlu1 %416 }
 0x13c   :  { %v420_v46 = vmul.f32 %v419_v44, %v417_v16 }
 0x13e   :  { %v421_v48 = vadd.f32 %v420_v46, %v414_v42 }
 0x140   :  { %v428_v12 = vadd.f32 %v427_v47, %v421_v48 }
 0x144   :  { %v431_v19 = vpop.permute.xlu1 %430 }
 0x145   :  { %v434_v52 = vmul.f32 %v433_v49, %v431_v19 }
 0x147   :  { %v435_v54 = vadd.f32 %v434_v52, %v428_v12 }
 0x149   :  { %v442_v23 = vadd.f32 %v441_v53, %v435_v54 }
 0x14b   :  { %443 = vst [vmem:[%s746_s7] sm:$0x3] %v442_v23 }

</bundles_post_ra>
